<compile_context>
chip_gen: v7x
topology: tpu7x:2x2x1
jax: 0.10.0
libtpu: 0.0.40
codegen_flags: <defaults>
</compile_context>

<pallas_src>
import functools

import jax
import jax.numpy as jnp
from jax.experimental import pallas as pl
from jax.experimental.pallas import tpu as pltpu

INPUT_SIZE = 1000            # TfidfVectorizer(max_features=1000)
H1, H2, H3, OUT = 256, 128, 64, 2

# Lane-aligned (multiple-of-128) padded dims used for the small tail layers.
H3_PAD = 128                 # 64 -> 128
OUT_PAD = 128                # 2  -> 128 (lane-dense output slab)


def _round_up(x, m):
    return (x + m - 1) // m * m


def _choose_block_b(B, max_block=1024):
    """Pick the batch tile.

    Rules (from the perf review):
      * multiple of 16 (bf16 packs 2 rows per sublane),
      * as large as possible up to `max_block` to fill the HBM pipeline,
      * >= 2 grid steps when the batch allows (shards the "parallel" batch axis
        across v7x's 2 TensorCores; harmless on v5e/v6e),
      * snap to a multiple of 256 only when it does not inflate batch padding
        (MXU-friendly M for fc1, which carries ~80% of the FLOPs).
    """
    b16 = _round_up(B, 16)
    if b16 > max_block:
        bb = max_block                       # already >= 2 grid steps
    else:
        bb = b16
        if bb >= 512:                        # split into two tiles for v7x
            bb = _round_up(bb // 2, 16)
    if bb >= 256:
        snapped = (bb // 256) * 256
        if _round_up(b16, snapped) <= _round_up(b16, bb):
            bb = snapped
    return max(bb, 16)


def _mlp_kernel(x_ref,
                w1_ref, b1_ref,
                w2_ref, b2_ref,
                w3_ref, b3_ref,
                w4_ref, b4_ref,
                o_ref):
    # f32 HBM read of x; cast to bf16 in VMEM for native-rate MXU matmuls with
    # f32 accumulation. Biases are added in f32.
    x = x_ref[...].astype(jnp.bfloat16)
    h = jnp.dot(x, w1_ref[...], preferred_element_type=jnp.float32)
    h = jnp.maximum(h + b1_ref[...], 0.0)
    # TODO(synk): training-mode dropout (p=0.3) omitted — eval semantics (identity).
    h = jnp.dot(h.astype(jnp.bfloat16), w2_ref[...],
                preferred_element_type=jnp.float32)
    h = jnp.maximum(h + b2_ref[...], 0.0)
    h = jnp.dot(h.astype(jnp.bfloat16), w3_ref[...],
                preferred_element_type=jnp.float32)
    h = jnp.maximum(h + b3_ref[...], 0.0)          # padded cols stay exactly 0
    h = jnp.dot(h.astype(jnp.bfloat16), w4_ref[...],
                preferred_element_type=jnp.float32)
    # Lane-dense (block_b, 128) bf16 slab -> unmasked stores, half the writeback.
    o_ref[...] = (h + b4_ref[...]).astype(o_ref.dtype)


@functools.partial(jax.jit, static_argnames=("max_block_b",))
def sentiment_nn_forward(x, kp, max_block_b=1024):
    """x: [B, INPUT_SIZE] float32.  kp: kernel-ready params (see prepare_params).

    Returns [B, 2] float32 logits.
    """
    B = x.shape[0]
    block_b = _choose_block_b(B, max_block_b)
    B_pad = _round_up(B, block_b)
    if B_pad != B:
        x = jnp.pad(x, ((0, B_pad - B), (0, 0)))   # cheap row-only pad

    grid = (B_pad // block_b,)

    def full_spec(shape):
        # Constant index_map across the grid -> the block is fetched once and
        # kept resident; no per-step re-DMA of the weights.
        return pl.BlockSpec(shape, lambda i: (0, 0))

    in_specs = [
        pl.BlockSpec((block_b, INPUT_SIZE), lambda i: (i, 0)),     # x tile (f32)
        full_spec((INPUT_SIZE, H1)),  full_spec((1, H1)),          # fc1
        full_spec((H1, H2)),          full_spec((1, H2)),          # fc2
        full_spec((H2, H3_PAD)),      full_spec((1, H3_PAD)),      # fc3 (padded)
        full_spec((H3_PAD, OUT_PAD)), full_spec((1, OUT_PAD)),     # fc4 (padded)
    ]
    out_spec = pl.BlockSpec((block_b, OUT_PAD), lambda i: (i, 0))

    flops = 2 * B_pad * (INPUT_SIZE * H1 + H1 * H2 + H2 * H3_PAD
                         + H3_PAD * OUT_PAD)
    weight_bytes = sum(int(v.size) * jnp.dtype(v.dtype).itemsize
                       for v in kp.values())
    bytes_accessed = (B_pad * INPUT_SIZE * 4          # f32 x read
                      + weight_bytes
                      + B_pad * OUT_PAD * 2)          # bf16 output slab

    out = pl.pallas_call(
        _mlp_kernel,
        out_shape=jax.ShapeDtypeStruct((B_pad, OUT_PAD), jnp.bfloat16),
        grid_spec=pltpu.PrefetchScalarGridSpec(
            num_scalar_prefetch=0,
            grid=grid,
            in_specs=in_specs,
            out_specs=out_spec,
        ),
        compiler_params=pltpu.CompilerParams(
            dimension_semantics=("parallel",),       # megacore-shard the batch
            vmem_limit_bytes=32 * 1024 * 1024,
        ),
        cost_estimate=pl.CostEstimate(
            flops=flops, transcendentals=0, bytes_accessed=bytes_accessed),
    )(x,
      kp["w1"], kp["b1"],
      kp["w2"], kp["b2"],
      kp["w3"], kp["b3"],
      kp["w4"], kp["b4"])

    # Real logits live in the first 2 lanes of the slab; return f32 for callers.
    return out[:B, :OUT].astype(jnp.float32)


def init_params(key):
    """PyTorch-style Linear init. Weights stored transposed [in, out], f32."""
    ks = jax.random.split(key, 8)

    def linear(kw, kb, fan_in, fan_out):
        bound = 1.0 / jnp.sqrt(fan_in)
        w = jax.random.uniform(kw, (fan_out, fan_in), jnp.float32, -bound, bound)
        b = jax.random.uniform(kb, (fan_out,), jnp.float32, -bound, bound)
        return w.T, b

    w1, b1 = linear(ks[0], ks[1], INPUT_SIZE, H1)
    w2, b2 = linear(ks[2], ks[3], H1, H2)
    w3, b3 = linear(ks[4], ks[5], H2, H3)
    w4, b4 = linear(ks[6], ks[7], H3, OUT)
    return dict(w1=w1, b1=b1, w2=w2, b2=b2, w3=w3, b3=b3, w4=w4, b4=b4)


def prepare_params(p):
    """Cast weights to bf16 and pad only the small tail layers to 128-wide.

    Zero padding keeps the math exact: padded h3 columns are exactly 0 after
    ReLU, and padded output columns carry exactly 0 logits (sliced off later).
    Biases stay f32 (added after the f32 MXU accumulation). w1 stays unpadded
    (1000, 256) so the kernel can consume the raw f32 x tile directly."""
    def pad2(a, rows, cols):
        out = jnp.zeros((rows, cols), a.dtype)
        return out.at[:a.shape[0], :a.shape[1]].set(a)

    def pad1(a, cols):
        out = jnp.zeros((cols,), a.dtype)
        return out.at[:a.shape[0]].set(a)

    return dict(
        w1=p["w1"].astype(jnp.bfloat16),                            # (1000, 256)
        b1=p["b1"].reshape(1, H1),
        w2=p["w2"].astype(jnp.bfloat16),                            # (256, 128)
        b2=p["b2"].reshape(1, H2),
        w3=pad2(p["w3"], H2, H3_PAD).astype(jnp.bfloat16),          # (128, 128)
        b3=pad1(p["b3"], H3_PAD).reshape(1, H3_PAD),
        w4=pad2(p["w4"], H3_PAD, OUT_PAD).astype(jnp.bfloat16),     # (128, 128)
        b4=pad1(p["b4"], OUT_PAD).reshape(1, OUT_PAD),
    )


def reference_forward_f32(x, p):
    h = jnp.maximum(x @ p["w1"] + p["b1"], 0.0)
    h = jnp.maximum(h @ p["w2"] + p["b2"], 0.0)
    h = jnp.maximum(h @ p["w3"] + p["b3"], 0.0)
    return h @ p["w4"] + p["b4"]


def reference_forward_bf16(x, p):
    """Mirrors the kernel's bf16-operand / f32-accumulate math (f32 output)."""
    def mm(a, w):
        return jnp.dot(a.astype(jnp.bfloat16), w.astype(jnp.bfloat16),
                       preferred_element_type=jnp.float32)
    h = jnp.maximum(mm(x, p["w1"]) + p["b1"], 0.0)
    h = jnp.maximum(mm(h, p["w2"]) + p["b2"], 0.0)
    h = jnp.maximum(mm(h, p["w3"]) + p["b3"], 0.0)
    return mm(h, p["w4"]) + p["b4"]


if __name__ == "__main__":
    key = jax.random.PRNGKey(0)
    k_x, k_p = jax.random.split(key)

    B = 16  # small batch
    # TF-IDF features are non-negative; use uniform [0, 1) inputs.
    x = jax.random.uniform(k_x, (B, INPUT_SIZE), jnp.float32)
    params = init_params(k_p)
    kparams = prepare_params(params)

    out = sentiment_nn_forward(x, kparams)
    out = jax.block_until_ready(out)
    assert out.shape == (B, OUT)

    ref_bf16 = reference_forward_bf16(x, params)   # same-precision reference
    ref_f32 = reference_forward_f32(x, params)     # full-f32 sanity reference
    # Kernel emits bf16 logits (padded slab), so allow bf16 rounding headroom.
    assert jnp.allclose(out, ref_bf16, atol=8e-3, rtol=2e-2), "mismatch vs bf16 reference"
    assert jnp.allclose(out, ref_f32, atol=5e-2, rtol=5e-2), "mismatch vs f32 reference"

    print("KERNEL_OK")
</pallas_src>

<mosaic_0001>
module attributes {stable_mosaic.version = 11 : i64} {
  func.func @_mlp_kernel(%arg0: i32, %arg1: memref<16x1000xf32, #tpu.memory_space<vmem>>, %arg2: memref<1000x256xbf16, #tpu.memory_space<vmem>>, %arg3: memref<1x256xf32, #tpu.memory_space<vmem>>, %arg4: memref<256x128xbf16, #tpu.memory_space<vmem>>, %arg5: memref<1x128xf32, #tpu.memory_space<vmem>>, %arg6: memref<128x128xbf16, #tpu.memory_space<vmem>>, %arg7: memref<1x128xf32, #tpu.memory_space<vmem>>, %arg8: memref<128x128xbf16, #tpu.memory_space<vmem>>, %arg9: memref<1x128xf32, #tpu.memory_space<vmem>>, %arg10: memref<16x128xbf16, #tpu.memory_space<vmem>>) attributes {dimension_semantics = [#tpu.dimension_semantics<parallel>], iteration_bounds = array<i64: 1>, scalar_prefetch = 0 : i64, scratch_operands = 0 : i64, tpu.core_type = #tpu.core_type<tc>, window_params = [{transform_indices = @transform_0, window_bounds = array<i64: 16, 1000>}, {pipeline_mode = #tpu.pipeline_mode<synchronous>, transform_indices = @transform_1, window_bounds = array<i64: 1000, 256>}, {pipeline_mode = #tpu.pipeline_mode<synchronous>, transform_indices = @transform_2, window_bounds = array<i64: 1, 256>}, {pipeline_mode = #tpu.pipeline_mode<synchronous>, transform_indices = @transform_3, window_bounds = array<i64: 256, 128>}, {pipeline_mode = #tpu.pipeline_mode<synchronous>, transform_indices = @transform_4, window_bounds = array<i64: 1, 128>}, {pipeline_mode = #tpu.pipeline_mode<synchronous>, transform_indices = @transform_5, window_bounds = array<i64: 128, 128>}, {pipeline_mode = #tpu.pipeline_mode<synchronous>, transform_indices = @transform_6, window_bounds = array<i64: 1, 128>}, {pipeline_mode = #tpu.pipeline_mode<synchronous>, transform_indices = @transform_7, window_bounds = array<i64: 128, 128>}, {pipeline_mode = #tpu.pipeline_mode<synchronous>, transform_indices = @transform_8, window_bounds = array<i64: 1, 128>}, {transform_indices = @transform_9, window_bounds = array<i64: 16, 128>}]} {
    %c0 = arith.constant 0 : index
    %c0_0 = arith.constant 0 : index
    %0 = vector.load %arg1[%c0, %c0_0] : memref<16x1000xf32, #tpu.memory_space<vmem>>, vector<16x1000xf32>
    %1 = arith.truncf %0 : vector<16x1000xf32> to vector<16x1000xbf16>
    %c0_1 = arith.constant 0 : index
    %c0_2 = arith.constant 0 : index
    %2 = vector.load %arg2[%c0_1, %c0_2] : memref<1000x256xbf16, #tpu.memory_space<vmem>>, vector<1000x256xbf16>
    %cst = arith.constant dense<0.000000e+00> : vector<16x256xf32>
    %3 = tpu.matmul %1, %2, %cst {dimension_numbers = #tpu.dot_dimension_numbers<[1], [0], [0], [1], [0, 0, 1, 1], [], []>} : vector<16x1000xbf16>, vector<1000x256xbf16>, vector<16x256xf32> -> vector<16x256xf32>
    %c0_3 = arith.constant 0 : index
    %c0_4 = arith.constant 0 : index
    %4 = vector.load %arg3[%c0_3, %c0_4] : memref<1x256xf32, #tpu.memory_space<vmem>>, vector<1x256xf32>
    %5 = vector.broadcast %4 : vector<1x256xf32> to vector<16x256xf32>
    %6 = arith.addf %3, %5 : vector<16x256xf32>
    %cst_5 = arith.constant 0.000000e+00 : f32
    %7 = vector.broadcast %cst_5 : f32 to vector<16x256xf32>
    %8 = arith.maximumf %6, %7 : vector<16x256xf32>
    %9 = arith.truncf %8 : vector<16x256xf32> to vector<16x256xbf16>
    %c0_6 = arith.constant 0 : index
    %c0_7 = arith.constant 0 : index
    %10 = vector.load %arg4[%c0_6, %c0_7] : memref<256x128xbf16, #tpu.memory_space<vmem>>, vector<256x128xbf16>
    %cst_8 = arith.constant dense<0.000000e+00> : vector<16x128xf32>
    %11 = tpu.matmul %9, %10, %cst_8 {dimension_numbers = #tpu.dot_dimension_numbers<[1], [0], [0], [1], [0, 0, 1, 1], [], []>} : vector<16x256xbf16>, vector<256x128xbf16>, vector<16x128xf32> -> vector<16x128xf32>
    %c0_9 = arith.constant 0 : index
    %c0_10 = arith.constant 0 : index
    %12 = vector.load %arg5[%c0_9, %c0_10] : memref<1x128xf32, #tpu.memory_space<vmem>>, vector<1x128xf32>
    %13 = vector.broadcast %12 : vector<1x128xf32> to vector<16x128xf32>
    %14 = arith.addf %11, %13 : vector<16x128xf32>
    %cst_11 = arith.constant 0.000000e+00 : f32
    %15 = vector.broadcast %cst_11 : f32 to vector<16x128xf32>
    %16 = arith.maximumf %14, %15 : vector<16x128xf32>
    %17 = arith.truncf %16 : vector<16x128xf32> to vector<16x128xbf16>
    %c0_12 = arith.constant 0 : index
    %c0_13 = arith.constant 0 : index
    %18 = vector.load %arg6[%c0_12, %c0_13] : memref<128x128xbf16, #tpu.memory_space<vmem>>, vector<128x128xbf16>
    %cst_14 = arith.constant dense<0.000000e+00> : vector<16x128xf32>
    %19 = tpu.matmul %17, %18, %cst_14 {dimension_numbers = #tpu.dot_dimension_numbers<[1], [0], [0], [1], [0, 0, 1, 1], [], []>} : vector<16x128xbf16>, vector<128x128xbf16>, vector<16x128xf32> -> vector<16x128xf32>
    %c0_15 = arith.constant 0 : index
    %c0_16 = arith.constant 0 : index
    %20 = vector.load %arg7[%c0_15, %c0_16] : memref<1x128xf32, #tpu.memory_space<vmem>>, vector<1x128xf32>
    %21 = vector.broadcast %20 : vector<1x128xf32> to vector<16x128xf32>
    %22 = arith.addf %19, %21 : vector<16x128xf32>
    %cst_17 = arith.constant 0.000000e+00 : f32
    %23 = vector.broadcast %cst_17 : f32 to vector<16x128xf32>
    %24 = arith.maximumf %22, %23 : vector<16x128xf32>
    %25 = arith.truncf %24 : vector<16x128xf32> to vector<16x128xbf16>
    %c0_18 = arith.constant 0 : index
    %c0_19 = arith.constant 0 : index
    %26 = vector.load %arg8[%c0_18, %c0_19] : memref<128x128xbf16, #tpu.memory_space<vmem>>, vector<128x128xbf16>
    %cst_20 = arith.constant dense<0.000000e+00> : vector<16x128xf32>
    %27 = tpu.matmul %25, %26, %cst_20 {dimension_numbers = #tpu.dot_dimension_numbers<[1], [0], [0], [1], [0, 0, 1, 1], [], []>} : vector<16x128xbf16>, vector<128x128xbf16>, vector<16x128xf32> -> vector<16x128xf32>
    %c0_21 = arith.constant 0 : index
    %c0_22 = arith.constant 0 : index
    %28 = vector.load %arg9[%c0_21, %c0_22] : memref<1x128xf32, #tpu.memory_space<vmem>>, vector<1x128xf32>
    %29 = vector.broadcast %28 : vector<1x128xf32> to vector<16x128xf32>
    %30 = arith.addf %27, %29 : vector<16x128xf32>
    %31 = arith.truncf %30 : vector<16x128xf32> to vector<16x128xbf16>
    %c0_23 = arith.constant 0 : index
    %c0_24 = arith.constant 0 : index
    %32 = vector.load %arg10[%c0_23, %c0_24] : memref<16x128xbf16, #tpu.memory_space<vmem>>, vector<16x128xbf16>
    tpu.vector_store %arg10[%c0_23, %c0_24], %31 {strides = array<i32>} : memref<16x128xbf16, #tpu.memory_space<vmem>>, vector<16x128xbf16>,
    return
  }
  func.func @transform_0(%arg0: i32) -> (i32, i32) {
    %c0_i32 = arith.constant 0 : i32
    %c0_i32_0 = arith.constant 0 : i32
    return %arg0, %c0_i32 : i32, i32
  }
  func.func @transform_1(%arg0: i32) -> (i32, i32) {
    %c0_i32 = arith.constant 0 : i32
    %c0_i32_0 = arith.constant 0 : i32
    %c0_i32_1 = arith.constant 0 : i32
    return %c0_i32, %c0_i32_0 : i32, i32
  }
  func.func @transform_2(%arg0: i32) -> (i32, i32) {
    %c0_i32 = arith.constant 0 : i32
    %c0_i32_0 = arith.constant 0 : i32
    %c0_i32_1 = arith.constant 0 : i32
    return %c0_i32, %c0_i32_0 : i32, i32
  }
  func.func @transform_3(%arg0: i32) -> (i32, i32) {
    %c0_i32 = arith.constant 0 : i32
    %c0_i32_0 = arith.constant 0 : i32
    %c0_i32_1 = arith.constant 0 : i32
    return %c0_i32, %c0_i32_0 : i32, i32
  }
  func.func @transform_4(%arg0: i32) -> (i32, i32) {
    %c0_i32 = arith.constant 0 : i32
    %c0_i32_0 = arith.constant 0 : i32
    %c0_i32_1 = arith.constant 0 : i32
    return %c0_i32, %c0_i32_0 : i32, i32
  }
  func.func @transform_5(%arg0: i32) -> (i32, i32) {
    %c0_i32 = arith.constant 0 : i32
    %c0_i32_0 = arith.constant 0 : i32
    %c0_i32_1 = arith.constant 0 : i32
    return %c0_i32, %c0_i32_0 : i32, i32
  }
  func.func @transform_6(%arg0: i32) -> (i32, i32) {
    %c0_i32 = arith.constant 0 : i32
    %c0_i32_0 = arith.constant 0 : i32
    %c0_i32_1 = arith.constant 0 : i32
    return %c0_i32, %c0_i32_0 : i32, i32
  }
  func.func @transform_7(%arg0: i32) -> (i32, i32) {
    %c0_i32 = arith.constant 0 : i32
    %c0_i32_0 = arith.constant 0 : i32
    %c0_i32_1 = arith.constant 0 : i32
    return %c0_i32, %c0_i32_0 : i32, i32
  }
  func.func @transform_8(%arg0: i32) -> (i32, i32) {
    %c0_i32 = arith.constant 0 : i32
    %c0_i32_0 = arith.constant 0 : i32
    %c0_i32_1 = arith.constant 0 : i32
    return %c0_i32, %c0_i32_0 : i32, i32
  }
  func.func @transform_9(%arg0: i32) -> (i32, i32) {
    %c0_i32 = arith.constant 0 : i32
    %c0_i32_0 = arith.constant 0 : i32
    return %arg0, %c0_i32 : i32, i32
  }
}

</mosaic_0001>

<bundles_post_ra>
// kernel: sentiment_nn_forward.1
= control target key start
LH: loop header
LB: loop body
LE: loop exit
PB: predicated region body
PF: predicated region fallthrough
CT: control target
= control target key end

     0   :  { %14 = vsyncpa [#allocation3], 0  ;;  %s2289_s0 = inlined_call_operand.hbm [shape: f32[16,1000], index: 0, kind: input, shape index: {}]   ;;  %s2290_s1 = inlined_call_operand.hbm [shape: bf16[1000,256], index: 1, kind: input, shape index: {}]   ;;  %s2291_s2 = inlined_call_operand.vmem [shape: f32[1,256], index: 2, kind: input, shape index: {}]   ;;  %s2292_s3 = inlined_call_operand.hbm [shape: bf16[256,128], index: 3, kind: input, shape index: {}]   ;;  %s2293_s4 = inlined_call_operand.vmem [shape: f32[1,128], index: 4, kind: input, shape index: {}]   ;;  %s2294_s5 = inlined_call_operand.hbm [shape: bf16[128,128], index: 5, kind: input, shape index: {}]   ;;  %s2295_s6 = inlined_call_operand.vmem [shape: f32[1,128], index: 6, kind: input, shape index: {}]   ;;  %s2296_s7 = inlined_call_operand.hbm [shape: bf16[128,128], index: 7, kind: input, shape index: {}]   ;;  %s2297_s8 = inlined_call_operand.vmem [shape: f32[1,128], index: 8, kind: input, shape index: {}]   ;;  %s2298_s9 = inlined_call_operand.vmem [shape: bf16[16,128], index: 9, kind: output, shape index: {}]  }
   0x1   :  { %15 = vsyncpa [#allocation5], 0 }
   0x2   :  { %16 = vsyncpa [#allocation8], 0  ;;  %s2115_s30 = smov [#allocation4]   ;;  %s1999_s13 = scalar_lea.hbm %s2290_s1, 16000 }
   0x3   :  { %s34_s10 = sshll.u32 %s2115_s30, 4  ;;  %p2000_p0 = scmp.ne.s32.totalorder %s2290_s1, %s1999_s13  ;;  %s35_s10 = int_to_ptr.vmem [resolvable:$true] %s34_s10 }
   0x4   :  { %p2003_p1 = scmp.lt.u32.totalorder %s1999_s13, %s2290_s1 }
   0x6   :  { %p2005_p2 = pnand %p2003_p1, %p2000_p0 }
   0x8   :  { %2008 = shalt.err (!%p2005_p2)
}
   0x9   :  { %s2009_s18 = scalar_lea.vmem %s35_s10, 16000  ;;  %p2014_p4 = scmp.lt.s32.totalorder %s35_s10, %s35_s10 }
   0xa   :  { %p2010_p3 = scmp.ne.s32.totalorder %s35_s10, %s2009_s18  ;;  %p2015_p5 = scmp.lt.s32.totalorder %s2009_s18, %s2009_s18 }
   0xc   :  { %p2016_p6 = por %p2015_p5, %p2014_p4 }
   0xe   :  { %p2017_p7 = pnand %p2016_p6, %p2010_p3 }
  0x10   :  { %2020 = shalt.err (!%p2017_p7)
}
  0x11   :  { %s2116_s19 = smov 128   ;;  %s2117_s20 = smov 8  }
  0x12   :  { %40 = dma.hbm_to_vmem [thread:$0]  %s2290_s1, 16000, %s35_s10, [#allocation5], %s2116_s19, %s2116_s19, %s2117_s20  }
  0x13   :  { %s2118_s23 = smov [#allocation7]   ;;  %s2119_s25 = smov [#allocation2]  }
  0x14   :  { %s62_s24 = sshll.u32 %s2118_s23, 4  ;;  %s22_s26 = sshll.u32 %s2119_s25, 4  ;;  %s63_s24 = int_to_ptr.vmem [resolvable:$true] %s62_s24  ;;  %s23_s26 = int_to_ptr.vmem [resolvable:$true] %s22_s26 }
  0x15   :  { %s2021_s29 = scalar_lea.hbm %s2294_s5, 1024 }
  0x16   :  { %p2022_p8 = scmp.ne.s32.totalorder %s2294_s5, %s2021_s29  ;;  %p2025_p9 = scmp.lt.u32.totalorder %s2021_s29, %s2294_s5 }
  0x18   :  { %p2027_p10 = pnand %p2025_p9, %p2022_p8 }
  0x1a   :  { %2030 = shalt.err (!%p2027_p10)
}
  0x1b   :  { %s2031_s1 = scalar_lea.vmem %s63_s24, 1024  ;;  %p2036_p12 = scmp.lt.s32.totalorder %s63_s24, %s63_s24 }
  0x1c   :  { %p2032_p11 = scmp.ne.s32.totalorder %s63_s24, %s2031_s1  ;;  %p2037_p13 = scmp.lt.s32.totalorder %s2031_s1, %s2031_s1 }
  0x1e   :  { %p2038_p0 = por %p2037_p13, %p2036_p12 }
  0x20   :  { %p2039_p1 = pnand %p2038_p0, %p2032_p11 }
  0x22   :  { %2042 = shalt.err (!%p2039_p1)
}
  0x23   :  { %s2120_s10 = smov 64   ;;  %s2121_s14 = smov 4  }
  0x24   :  { %68 = dma.hbm_to_vmem [thread:$0]  %s2294_s5, 1024, %s63_s24, [#allocation8], %s2120_s10, %s2120_s10, %s2121_s14  }
  0x25   :  { %s2043_s19 = scalar_lea.hbm %s2289_s0, 2048 }
  0x26   :  { %p2044_p2 = scmp.ne.s32.totalorder %s2289_s0, %s2043_s19  ;;  %p2047_p3 = scmp.lt.u32.totalorder %s2043_s19, %s2289_s0 }
  0x28   :  { %p2049_p4 = pnand %p2047_p3, %p2044_p2 }
  0x2a   :  { %2052 = shalt.err (!%p2049_p4)
}
  0x2b   :  { %s2053_s25 = scalar_lea.vmem %s23_s26, 2048  ;;  %p2058_p6 = scmp.lt.s32.totalorder %s23_s26, %s23_s26 }
  0x2c   :  { %p2054_p5 = scmp.ne.s32.totalorder %s23_s26, %s2053_s25  ;;  %p2059_p7 = scmp.lt.s32.totalorder %s2053_s25, %s2053_s25 }
  0x2e   :  { %p2060_p8 = por %p2059_p7, %p2058_p6 }
  0x30   :  { %p2061_p9 = pnand %p2060_p8, %p2054_p5 }
  0x32   :  { %2064 = shalt.err (!%p2061_p9)
}
  0x33   :  { %s2122_s5 = smov 1024   ;;  %s2123_s28 = smov [#allocation6]  }
  0x34   :  { %28 = dma.hbm_to_vmem [thread:$0]  %s2289_s0, 2048, %s23_s26, [#allocation3], %s2122_s5, %s2122_s5, %s2120_s10  }
  0x35   :  { %s48_s29 = sshll.u32 %s2123_s28, 4  ;;  %s2124_s30 = smov [#allocation9]   ;;  %s49_s29 = int_to_ptr.vmem [resolvable:$true] %s48_s29 }
  0x36   :  { %s76_s11 = sshll.u32 %s2124_s30, 4  ;;  %s2065_s1 = scalar_lea.hbm %s2292_s3, 2048  ;;  %s2217_s11 = int_to_ptr.vmem [resolvable:$true] %s76_s11 }
  0x37   :  { %p2066_p10 = scmp.ne.s32.totalorder %s2292_s3, %s2065_s1  ;;  %p2069_p11 = scmp.lt.u32.totalorder %s2065_s1, %s2292_s3 }
  0x39   :  { %p2071_p12 = pnand %p2069_p11, %p2066_p10 }
  0x3b   :  { %2074 = shalt.err (!%p2071_p12)
}
  0x3c   :  { %s2075_s0 = scalar_lea.vmem %s49_s29, 2048  ;;  %p2080_p0 = scmp.lt.s32.totalorder %s49_s29, %s49_s29 }
  0x3d   :  { %p2076_p13 = scmp.ne.s32.totalorder %s49_s29, %s2075_s0  ;;  %p2081_p1 = scmp.lt.s32.totalorder %s2075_s0, %s2075_s0 }
  0x3f   :  { %p2082_p2 = por %p2081_p1, %p2080_p0 }
  0x41   :  { %p2083_p3 = pnand %p2082_p2, %p2076_p13 }
  0x43   :  { %2086 = shalt.err (!%p2083_p3)
}
  0x44   :  { %54 = dma.hbm_to_vmem [thread:$0]  %s2292_s3, 2048, %s49_s29, [#allocation5], %s2120_s10, %s2120_s10, %s2121_s14  }
  0x45   :  { %s2087_s22 = scalar_lea.hbm %s2296_s7, 1024 }
  0x46   :  { %p2088_p4 = scmp.ne.s32.totalorder %s2296_s7, %s2087_s22  ;;  %p2091_p5 = scmp.lt.u32.totalorder %s2087_s22, %s2296_s7 }
  0x48   :  { %p2093_p6 = pnand %p2091_p5, %p2088_p4 }
  0x4a   :  { %2096 = shalt.err (!%p2093_p6)
}
  0x4b   :  { %s2097_s27 = scalar_lea.vmem %s2217_s11, 1024  ;;  %p2102_p8 = scmp.lt.s32.totalorder %s2217_s11, %s2217_s11 }
  0x4c   :  { %p2098_p7 = scmp.ne.s32.totalorder %s2217_s11, %s2097_s27  ;;  %p2103_p9 = scmp.lt.s32.totalorder %s2097_s27, %s2097_s27 }
  0x4e   :  { %p2104_p10 = por %p2103_p9, %p2102_p8 }
  0x50   :  { %p2105_p11 = pnand %p2104_p10, %p2098_p7 }
  0x52   :  { %2108 = shalt.err (!%p2105_p11)
}
  0x53   :  { %82 = dma.hbm_to_vmem [thread:$0]  %s2296_s7, 1024, %s2217_s11, [#allocation8], %s2120_s10, %s2120_s10, %s2121_s14  }
  0x54   :  { %2109 = dma.done.wait [#allocation3], 2048  }
  0x55   :  { %2110 = vsyncadd [#allocation3], 4294965248 }
  0x56   :  { %2111 = dma.done.wait [#allocation5], 18048  }
  0x57   :  { %2112 = vsyncadd [#allocation5], 4294949248 }
  0x58   :  { %2113 = dma.done.wait [#allocation8], 2048  }
  0x59   :  { %2114 = vsyncadd [#allocation8], 4294965248  ;;  %v1779_v0 = vld [vmem:[#allocation4 + $0x104] ss:$8 sps:$4 sm:$0xff]   ;;  %v1781_v1 = vld [vmem:[#allocation4 + $0x100] ss:$8 sps:$4 sm:$0xff]  }
  0x5a   :  { %941 = vmatprep.subr.bf16.mxu0 %v1779_v0  ;;  %v1782_v2 = vld [vmem:[#allocation4 + $0x114] ss:$8 sps:$4 sm:$0xff]   ;;  %v1784_v3 = vld [vmem:[#allocation4 + $0x110] ss:$8 sps:$4 sm:$0xff]   ;;  %v1785_v4 = vld [vmem:[#allocation4 + $0x124] ss:$8 sps:$4 sm:$0xff]  }
  0x5b   :  { %942 = vmatpush1.bf16.msra.mxu0 %v1781_v1  ;;  %v1787_v5 = vld [vmem:[#allocation4 + $0x120] ss:$8 sps:$4 sm:$0xff]   ;;  %v1788_v6 = vld [vmem:[#allocation4 + $0x134] ss:$8 sps:$4 sm:$0xff]   ;;  %v1790_v7 = vld [vmem:[#allocation4 + $0x130] ss:$8 sps:$4 sm:$0xff]  }
  0x5c   :  { %943 = vmatprep.subr.bf16.mxu0 %v1782_v2  ;;  %v1791_v8 = vld [vmem:[#allocation4 + $0x144] ss:$8 sps:$4 sm:$0xff]   ;;  %v1793_v9 = vld [vmem:[#allocation4 + $0x140] ss:$8 sps:$4 sm:$0xff]   ;;  %v1794_v10 = vld [vmem:[#allocation4 + $0x154] ss:$8 sps:$4 sm:$0xff]  }
  0x5d   :  { %v1796_v11 = vld [vmem:[#allocation4 + $0x150] ss:$8 sps:$4 sm:$0xff]   ;;  %v1797_v12 = vld [vmem:[#allocation4 + $0x164] ss:$8 sps:$4 sm:$0xff]   ;;  %v1799_v16 = vld [vmem:[#allocation4 + $0x160] ss:$8 sps:$4 sm:$0xff]  }
  0x5e   :  { %v104_v13 = vld [vmem:[#allocation2 + $0x18] sm:$0xff]  ;;  %v1803_v19 = vld [vmem:[#allocation4 + $0x184] ss:$8 sps:$4 sm:$0xff]   ;;  %v1805_v20 = vld [vmem:[#allocation4 + $0x180] ss:$8 sps:$4 sm:$0xff]   ;;  %vm887_vm0 = vcmask 850944  }
  0x5f   :  { %944 = vmatpush1.bf16.msra.mxu0 %v1784_v3  ;;  %v112_v14 = vld [vmem:[#allocation2 + $0x58] sm:$0xff]  ;;  %v1809_v23 = vld [vmem:[#allocation4 + $0x1a4] ss:$8 sps:$4 sm:$0xff]   ;;  %v1811_v24 = vld [vmem:[#allocation4 + $0x1a0] ss:$8 sps:$4 sm:$0xff]   ;;  %vm891_vm1 = vcmask 1043456  }
  0x60   :  { %945 = vmatprep.subr.bf16.mxu0 %v1785_v4  ;;  %v120_v15 = vpack.c.bf16 %v112_v14, %v104_v13  ;;  %v1800_v17 = vld [vmem:[#allocation4 + $0x174] ss:$8 sps:$4 sm:$0xff]   ;;  %v1802_v18 = vld [vmem:[#allocation4 + $0x170] ss:$8 sps:$4 sm:$0xff]   ;;  %v1869_v26 = vld [vmem:[#allocation4 + $0x4] ss:$8 sps:$4 sm:$0xff]  }
  0x61   :  { %v1806_v21 = vld [vmem:[#allocation4 + $0x194] ss:$8 sps:$4 sm:$0xff]   ;;  %v1808_v22 = vld [vmem:[#allocation4 + $0x190] ss:$8 sps:$4 sm:$0xff]   ;;  %v1871_v27 = vld [vmem:[#allocation4] ss:$8 sps:$4 sm:$0xff]   ;;  %898 = vmatprep.subr.bf16.mxu1 %v1869_v26 }
  0x62   :  { %973 = vmatprep.mubr.bf16.mxu0 %v120_v15  ;;  %v1812_v25 = vld [vmem:[#allocation4 + $0x1b4] ss:$8 sps:$4 sm:$0xff]   ;;  %v1814_v28 = vld [vmem:[#allocation4 + $0x1b0] ss:$8 sps:$4 sm:$0xff]   ;;  %v1815_v29 = vld [vmem:[#allocation4 + $0x1c4] ss:$8 sps:$4 sm:$0xff]   ;;  %899 = vmatpush1.bf16.msra.mxu1 %v1871_v27 }
  0x63   :  { %946 = vmatpush1.bf16.msra.mxu0 %v1787_v5  ;;  %v1875_v30 = vld [vmem:[#allocation4 + $0x14] ss:$8 sps:$4 sm:$0xff]   ;;  %v1877_v31 = vld [vmem:[#allocation4 + $0x10] ss:$8 sps:$4 sm:$0xff]   ;;  %v1817_v32 = vld [vmem:[#allocation4 + $0x1c0] ss:$8 sps:$4 sm:$0xff]  }
  0x64   :  { %947 = vmatprep.subr.bf16.mxu0 %v1788_v6  ;;  %900 = vmatprep.subr.bf16.mxu1 %v1875_v30  ;;  %v1881_v33 = vld [vmem:[#allocation4 + $0x24] ss:$8 sps:$4 sm:$0xff]   ;;  %v1818_v34 = vld [vmem:[#allocation4 + $0x1d4] ss:$8 sps:$4 sm:$0xff]   ;;  %v1883_v35 = vld [vmem:[#allocation4 + $0x20] ss:$8 sps:$4 sm:$0xff]  }
  0x65   :  { %v1820_v36 = vld [vmem:[#allocation4 + $0x1d0] ss:$8 sps:$4 sm:$0xff]   ;;  %v1887_v37 = vld [vmem:[#allocation4 + $0x34] ss:$8 sps:$4 sm:$0xff]   ;;  %v1821_v38 = vld [vmem:[#allocation4 + $0x1e4] ss:$8 sps:$4 sm:$0xff]  }
  0x66   :  { %901 = vmatpush1.bf16.msra.mxu1 %v1877_v31  ;;  %v1889_v39 = vld [vmem:[#allocation4 + $0x30] ss:$8 sps:$4 sm:$0xff]   ;;  %v1893_v40 = vld [vmem:[#allocation4 + $0x44] ss:$8 sps:$4 sm:$0xff]   ;;  %v1823_v41 = vld [vmem:[#allocation4 + $0x1e0] ss:$8 sps:$4 sm:$0xff]  }
  0x67   :  { %948 = vmatpush1.bf16.msra.mxu0 %v1790_v7  ;;  %902 = vmatprep.subr.bf16.mxu1 %v1881_v33  ;;  %v1824_v42 = vld [vmem:[#allocation4 + $0x1f4] ss:$8 sps:$4 sm:$0xff]   ;;  %v1826_v43 = vld [vmem:[#allocation4 + $0x1f0] ss:$8 sps:$4 sm:$0xff]   ;;  %v1895_v44 = vld [vmem:[#allocation4 + $0x40] ss:$8 sps:$4 sm:$0xff]  }
  0x68   :  { %949 = vmatprep.subr.bf16.mxu0 %v1791_v8  ;;  %v1829_v45 = vld [vmem:[#allocation4 + $0x204] ss:$8 sps:$4 sm:$0xff]   ;;  %v103_v46 = vld [vmem:[#allocation2 + $0x10] sm:$0xff]  ;;  %v1827_v54 = vld [vmem:[#allocation4 + $0x200] ss:$8 sps:$4 sm:$0xff]   ;;  %vm2126_vm2 = vmmov 0  }
  0x69   :  { %v1899_v47 = vld [vmem:[#allocation4 + $0x54] ss:$8 sps:$4 sm:$0xff]   ;;  %v106_v49 = vld [vmem:[#allocation2 + $0x28] sm:$0xff]  ;;  %v1901_v51 = vld [vmem:[#allocation4 + $0x50] ss:$8 sps:$4 sm:$0xff]  }
  0x6a   :  { %903 = vmatpush1.bf16.msra.mxu1 %v1883_v35  ;;  %v111_v48 = vld [vmem:[#allocation2 + $0x50] sm:$0xff]  ;;  %v114_v50 = vld [vmem:[#allocation2 + $0x68] sm:$0xff]  ;;  %v101_v33 = vld [vmem:[#allocation2] sm:$0xff] }
  0x6b   :  { %950 = vmatpush1.bf16.msra.mxu0 %v1793_v9  ;;  %904 = vmatprep.subr.bf16.mxu1 %v1887_v37  ;;  %v119_v52 = vpack.c.bf16 %v111_v48, %v103_v46  ;;  %v1905_v53 = vld [vmem:[#allocation4 + $0x64] ss:$8 sps:$4 sm:$0xff]   ;;  %v122_v55 = vpack.c.bf16 %v114_v50, %v106_v49  ;;  %v1832_v56 = vld [vmem:[#allocation4 + $0x214] ss:$8 sps:$4 sm:$0xff]   ;;  %v1907_v57 = vld [vmem:[#allocation4 + $0x60] ss:$8 sps:$4 sm:$0xff]  }
  0x6c   :  { %951 = vmatprep.subr.bf16.mxu0 %v1794_v10  ;;  %v1911_v58 = vld [vmem:[#allocation4 + $0x74] ss:$8 sps:$4 sm:$0xff]   ;;  %v1830_v59 = vld [vmem:[#allocation4 + $0x210] ss:$8 sps:$4 sm:$0xff]   ;;  %v1835_v60 = vld [vmem:[#allocation4 + $0x224] ss:$8 sps:$4 sm:$0xff]  }
  0x6d   :  { %v1913_v61 = vld [vmem:[#allocation4 + $0x70] ss:$8 sps:$4 sm:$0xff]   ;;  %v1917_v62 = vld [vmem:[#allocation4 + $0x84] ss:$8 sps:$4 sm:$0xff]   ;;  %v1833_v63 = vld [vmem:[#allocation4 + $0x220] ss:$8 sps:$4 sm:$0xff]  }
  0x6e   :  { %905 = vmatpush1.bf16.msra.mxu1 %v1889_v39  ;;  %v1838_v0 = vld [vmem:[#allocation4 + $0x234] ss:$8 sps:$4 sm:$0xff]   ;;  %v1919_v1 = vld [vmem:[#allocation4 + $0x80] ss:$8 sps:$4 sm:$0xff]   ;;  %v1836_v3 = vld [vmem:[#allocation4 + $0x230] ss:$8 sps:$4 sm:$0xff]  }
  0x6f   :  { %952 = vmatpush1.bf16.msra.mxu0 %v1796_v11  ;;  %906 = vmatprep.subr.bf16.mxu1 %v1893_v40  ;;  %v1923_v2 = vld [vmem:[#allocation4 + $0x94] ss:$8 sps:$4 sm:$0xff]   ;;  %v1841_v4 = vld [vmem:[#allocation4 + $0x244] ss:$8 sps:$4 sm:$0xff]   ;;  %v1925_v5 = vld [vmem:[#allocation4 + $0x90] ss:$8 sps:$4 sm:$0xff]  }
  0x70   :  { %953 = vmatprep.subr.bf16.mxu0 %v1797_v12  ;;  %v1929_v6 = vld [vmem:[#allocation4 + $0xa4] ss:$8 sps:$4 sm:$0xff]   ;;  %v1839_v7 = vld [vmem:[#allocation4 + $0x240] ss:$8 sps:$4 sm:$0xff]   ;;  %v1844_v8 = vld [vmem:[#allocation4 + $0x254] ss:$8 sps:$4 sm:$0xff]  }
  0x71   :  { %v1931_v9 = vld [vmem:[#allocation4 + $0xa0] ss:$8 sps:$4 sm:$0xff]   ;;  %v1935_v10 = vld [vmem:[#allocation4 + $0xb4] ss:$8 sps:$4 sm:$0xff]   ;;  %v1842_v11 = vld [vmem:[#allocation4 + $0x250] ss:$8 sps:$4 sm:$0xff]  }
  0x72   :  { %907 = vmatpush1.bf16.msra.mxu1 %v1895_v44  ;;  %v1847_v12 = vld [vmem:[#allocation4 + $0x264] ss:$8 sps:$4 sm:$0xff]   ;;  %v1937_v13 = vld [vmem:[#allocation4 + $0xb0] ss:$8 sps:$4 sm:$0xff]   ;;  %v1856_v27 = vld [vmem:[#allocation4 + $0x294] ss:$8 sps:$4 sm:$0xff]  }
  0x73   :  { %954 = vmatpush1.bf16.msra.mxu0 %v1799_v16  ;;  %908 = vmatprep.subr.bf16.mxu1 %v1899_v47  ;;  %v102_v14 = vld [vmem:[#allocation2 + $0x8] sm:$0xff]  ;;  %v1854_v30 = vld [vmem:[#allocation4 + $0x290] ss:$8 sps:$4 sm:$0xff]   ;;  %v1862_v37 = vld [vmem:[#allocation4 + $0x2b4] ss:$8 sps:$4 sm:$0xff]  }
  0x74   :  { %955 = vmatprep.subr.bf16.mxu0 %v1800_v17  ;;  %v110_v15 = vld [vmem:[#allocation2 + $0x48] sm:$0xff]  ;;  %v1969_v40 = vld [vmem:[#allocation6 + $0x48] sm:$0xff]   ;;  %v1971_v44 = vld [vmem:[#allocation6 + $0x50] sm:$0xff]  }
  0x75   :  { %v1941_v16 = vld [vmem:[#allocation4 + $0xc4] ss:$8 sps:$4 sm:$0xff]   ;;  %v118_v17 = vpack.c.bf16 %v110_v15, %v102_v14  ;;  %v1868_v46 = vld [vmem:[#allocation4 + $0x2d4] ss:$8 sps:$4 sm:$0xff]   ;;  %v1866_v49 = vld [vmem:[#allocation4 + $0x2d0] ss:$8 sps:$4 sm:$0xff]  }
  0x76   :  { %909 = vmatpush1.bf16.msra.mxu1 %v1901_v51  ;;  %v1953_v26 = vld [vmem:[#allocation4 + $0xe4] ss:$8 sps:$4 sm:$0xff]   ;;  %v1972_v47 = vld [vmem:[#allocation6 + $0x10] sm:$0xff]   ;;  %v1932_v14 = vld [vmem:[#allocation4 + $0x380] ss:$8 sps:$4 sm:$0xff]  }
  0x77   :  { %956 = vmatpush1.bf16.msra.mxu0 %v1802_v18  ;;  %910 = vmatprep.subr.bf16.mxu1 %v1905_v53  ;;  %v1845_v18 = vld [vmem:[#allocation4 + $0x260] ss:$8 sps:$4 sm:$0xff]   ;;  %v1859_v31 = vld [vmem:[#allocation4 + $0x2a4] ss:$8 sps:$4 sm:$0xff]   ;;  %v1880_v53 = vld [vmem:[#allocation4 + $0x2f4] ss:$8 sps:$4 sm:$0xff]  }
  0x78   :  { %957 = vmatprep.subr.bf16.mxu0 %v1803_v19  ;;  %v1850_v19 = vld [vmem:[#allocation4 + $0x274] ss:$8 sps:$4 sm:$0xff]   ;;  %930 = vmatprep.mubr.bf16.mxu1 %v118_v17  ;;  %v1967_v35 = vld [vmem:[#allocation6 + $0x40] sm:$0xff]   ;;  %v1973_v48 = vld [vmem:[#allocation6 + $0x58] sm:$0xff]  }
  0x79   :  { %v1874_v50 = vld [vmem:[#allocation4 + $0x2e4] ss:$8 sps:$4 sm:$0xff]   ;;  %v1940_v15 = vld [vmem:[#allocation4 + $0x394] ss:$8 sps:$4 sm:$0xff]  }
  0x7a   :  { %911 = vmatpush1.bf16.msra.mxu1 %v1907_v57  ;;  %v1974_v51 = vld [vmem:[#allocation6 + $0x18] sm:$0xff]  }
  0x7b   :  { %958 = vmatpush1.bf16.msra.mxu0 %v1805_v20  ;;  %912 = vmatprep.subr.bf16.mxu1 %v1911_v58  ;;  %v1943_v20 = vld [vmem:[#allocation4 + $0xc0] ss:$8 sps:$4 sm:$0xff]   ;;  %v1886_v57 = vld [vmem:[#allocation4 + $0x304] ss:$8 sps:$4 sm:$0xff]   ;;  %v108_v58 = vld [vmem:[#allocation2 + $0x38] sm:$0xff] }
  0x7c   :  { %959 = vmatprep.subr.bf16.mxu0 %v1806_v21  ;;  %v1947_v21 = vld [vmem:[#allocation4 + $0xd4] ss:$8 sps:$4 sm:$0xff]   ;;  %v1946_v17 = vld [vmem:[#allocation4 + $0x3a4] ss:$8 sps:$4 sm:$0xff]  }
  0x7e   :  { %913 = vmatpush1.bf16.msra.mxu1 %v1913_v61  ;;  %v1884_v61 = vld [vmem:[#allocation4 + $0x300] ss:$8 sps:$4 sm:$0xff]  }
  0x7f   :  { %960 = vmatpush1.bf16.msra.mxu0 %v1808_v22  ;;  %914 = vmatprep.subr.bf16.mxu1 %v1917_v62  ;;  %v1848_v22 = vld [vmem:[#allocation4 + $0x270] ss:$8 sps:$4 sm:$0xff]  }
  0x80   :  { %961 = vmatprep.subr.bf16.mxu0 %v1809_v23  ;;  %v1853_v23 = vld [vmem:[#allocation4 + $0x284] ss:$8 sps:$4 sm:$0xff]  }
  0x82   :  { %915 = vmatpush1.bf16.msra.mxu1 %v1919_v1  ;;  %v1898_v1 = vld [vmem:[#allocation4 + $0x324] ss:$8 sps:$4 sm:$0xff]  }
  0x83   :  { %962 = vmatpush1.bf16.msra.mxu0 %v1811_v24  ;;  %916 = vmatprep.subr.bf16.mxu1 %v1923_v2  ;;  %v1851_v24 = vld [vmem:[#allocation4 + $0x280] ss:$8 sps:$4 sm:$0xff]  }
  0x84   :  { %963 = vmatprep.subr.bf16.mxu0 %v1812_v25  ;;  %v1949_v25 = vld [vmem:[#allocation4 + $0xd0] ss:$8 sps:$4 sm:$0xff]   ;;  %v1896_v2 = vld [vmem:[#allocation4 + $0x320] ss:$8 sps:$4 sm:$0xff]  }
  0x86   :  { %917 = vmatpush1.bf16.msra.mxu1 %v1925_v5  ;;  %v1910_v5 = vld [vmem:[#allocation4 + $0x344] ss:$8 sps:$4 sm:$0xff]  }
  0x87   :  { %964 = vmatpush1.bf16.msra.mxu0 %v1814_v28  ;;  %918 = vmatprep.subr.bf16.mxu1 %v1929_v6  ;;  %v1955_v28 = vld [vmem:[#allocation4 + $0xe0] ss:$8 sps:$4 sm:$0xff]  }
  0x88   :  { %965 = vmatprep.subr.bf16.mxu0 %v1815_v29  ;;  %v1959_v29 = vld [vmem:[#allocation4 + $0xf4] ss:$8 sps:$4 sm:$0xff]   ;;  %v1908_v6 = vld [vmem:[#allocation4 + $0x340] ss:$8 sps:$4 sm:$0xff]  }
  0x8a   :  { %919 = vmatpush1.bf16.msra.mxu1 %v1931_v9  ;;  %v1922_v9 = vld [vmem:[#allocation4 + $0x364] ss:$8 sps:$4 sm:$0xff]  }
  0x8b   :  { %966 = vmatpush1.bf16.msra.mxu0 %v1817_v32  ;;  %920 = vmatprep.subr.bf16.mxu1 %v1935_v10  ;;  %v1961_v32 = vld [vmem:[#allocation4 + $0xf0] ss:$8 sps:$4 sm:$0xff]   ;;  %v1920_v10 = vld [vmem:[#allocation4 + $0x360] ss:$8 sps:$4 sm:$0xff]  }
  0x8c   :  { %967 = vmatprep.subr.bf16.mxu0 %v1818_v34  ;;  %v109_v34 = vld [vmem:[#allocation2 + $0x40] sm:$0xff] }
  0x8d   :  { %v117_v39 = vpack.c.bf16 %v109_v34, %v101_v33  ;;  %v1976_v33 = vld [vmem:[#allocation6 + $0x20] sm:$0xff]   ;;  %v1977_v34 = vld [vmem:[#allocation6 + $0x68] sm:$0xff]  }
  0x8e   :  { %921 = vmatpush1.bf16.msra.mxu1 %v1937_v13  ;;  %v1934_v13 = vld [vmem:[#allocation4 + $0x384] ss:$8 sps:$4 sm:$0xff]  }
  0x8f   :  { %968 = vmatpush1.bf16.msra.mxu0 %v1820_v36  ;;  %922 = vmatprep.subr.bf16.mxu1 %v1941_v16  ;;  %v1857_v36 = vld [vmem:[#allocation4 + $0x2a0] ss:$8 sps:$4 sm:$0xff]   ;;  %v1938_v16 = vld [vmem:[#allocation4 + $0x390] ss:$8 sps:$4 sm:$0xff]  }
  0x90   :  { %969 = vmatprep.subr.bf16.mxu0 %v1821_v38  ;;  %v1968_v38 = vld [vmem:[#allocation6] sm:$0xff]  }
  0x92   :  { %923 = vmatpush1.bf16.msra.mxu1 %v1943_v20  ;;  %v1950_v20 = vld [vmem:[#allocation4 + $0x3b0] ss:$8 sps:$4 sm:$0xff]  }
  0x93   :  { %970 = vmatpush1.bf16.msra.mxu0 %v1823_v41  ;;  %924 = vmatprep.subr.bf16.mxu1 %v1947_v21  ;;  %v1860_v41 = vld [vmem:[#allocation4 + $0x2b0] ss:$8 sps:$4 sm:$0xff]   ;;  %v1958_v21 = vld [vmem:[#allocation4 + $0x3c4] ss:$8 sps:$4 sm:$0xff]  }
  0x94   :  { %971 = vmatprep.subr.bf16.mxu0 %v1824_v42  ;;  %v1865_v42 = vld [vmem:[#allocation4 + $0x2c4] ss:$8 sps:$4 sm:$0xff]  }
  0x96   :  { %925 = vmatpush1.bf16.msra.mxu1 %v1949_v25  ;;  %v1962_v25 = vld [vmem:[#allocation4 + $0x3d0] ss:$8 sps:$4 sm:$0xff]  }
  0x97   :  { %972 = vmatpush1.bf16.msra.mxu0 %v1826_v43  ;;  %926 = vmatprep.subr.bf16.mxu1 %v1953_v26  ;;  %v1970_v43 = vld [vmem:[#allocation6 + $0x8] sm:$0xff]  }
  0x98   :  { %984 = vmatprep.subr.bf16.mxu0 %v1829_v45  ;;  %v1863_v45 = vld [vmem:[#allocation4 + $0x2c0] ss:$8 sps:$4 sm:$0xff]  }
  0x9a   :  { %974 = vmatmul.mubr.bf16.vlgmr.msra.gmra.mrb[0].mxu0 %v119_v52  ;;  %927 = vmatpush1.bf16.msra.mxu1 %v1955_v28  ;;  %v1872_v52 = vld [vmem:[#allocation4 + $0x2e0] ss:$8 sps:$4 sm:$0xff]   ;;  %v107_v28 = vld [vmem:[#allocation2 + $0x30] sm:$0xff] }
  0x9b   :  { %985 = vmatpush1.bf16.msra.mxu0 %v1827_v54  ;;  %1016 = vmatprep.mubr.bf16.mxu0 %v122_v55  ;;  %v1878_v54 = vld [vmem:[#allocation4 + $0x2f0] ss:$8 sps:$4 sm:$0xff]   ;;  %v105_v55 = vld [vmem:[#allocation2 + $0x20] sm:$0xff] }
  0x9c   :  { %986 = vmatprep.subr.bf16.mxu0 %v1832_v56  ;;  %928 = vmatprep.subr.bf16.mxu1 %v1959_v29  ;;  %v113_v56 = vld [vmem:[#allocation2 + $0x60] sm:$0xff]  ;;  %v115_v29 = vld [vmem:[#allocation2 + $0x70] sm:$0xff] }
  0x9e   :  { %929 = vmatpush1.bf16.msra.mxu1 %v1961_v32  ;;  %v1975_v32 = vld [vmem:[#allocation6 + $0x60] sm:$0xff]  }
  0x9f   :  { %987 = vmatpush1.bf16.msra.mxu0 %v1830_v59  ;;  %1671 = vmatprep.subr.bf16.mxu1 %v1967_v35  ;;  %v116_v59 = vld [vmem:[#allocation2 + $0x78] sm:$0xff]  ;;  %v1978_v35 = vld [vmem:[#allocation6 + $0x28] sm:$0xff]  }
  0xa0   :  { %988 = vmatprep.subr.bf16.mxu0 %v1835_v60  ;;  %v121_v60 = vpack.c.bf16 %v113_v56, %v105_v55  ;;  %v124_v62 = vpack.c.bf16 %v116_v59, %v108_v58 }
  0xa1   :  { %931 = vmatmul.mubr.bf16.vlgmr.msra.gmra.mrb[0].mxu1 %v117_v39  ;;  %v1982_v39 = vld [vmem:[#allocation6 + $0x38] sm:$0xff]  }
  0xa2   :  { %1672 = vmatpush3.bf16.msra.mxu1 %v1968_v38  ;;  %v1981_v38 = vld [vmem:[#allocation6 + $0x78] sm:$0xff]  }
  0xa3   :  { %989 = vmatpush1.bf16.msra.mxu0 %v1833_v63  ;;  %1673 = vmatprep.subr.bf16.mxu1 %v1969_v40  ;;  %v1892_v63 = vld [vmem:[#allocation4 + $0x314] ss:$8 sps:$4 sm:$0xff]   ;;  %v2125_v40 = vmov 0.0  }
  0xa4   :  { %990 = vmatprep.subr.bf16.mxu0 %v1838_v0  ;;  %v1890_v0 = vld [vmem:[#allocation4 + $0x310] ss:$8 sps:$4 sm:$0xff]  }
  0xa6   :  { %1674 = vmatpush3.bf16.msra.mxu1 %v1970_v43 }
  0xa7   :  { %991 = vmatpush1.bf16.msra.mxu0 %v1836_v3  ;;  %1675 = vmatprep.subr.bf16.mxu1 %v1971_v44  ;;  %v1904_v3 = vld [vmem:[#allocation4 + $0x334] ss:$8 sps:$4 sm:$0xff]  }
  0xa8   :  { %992 = vmatprep.subr.bf16.mxu0 %v1841_v4  ;;  %v1902_v4 = vld [vmem:[#allocation4 + $0x330] ss:$8 sps:$4 sm:$0xff]  }
  0xaa   :  { %1676 = vmatpush3.bf16.msra.mxu1 %v1972_v47 }
  0xab   :  { %993 = vmatpush1.bf16.msra.mxu0 %v1839_v7  ;;  %1677 = vmatprep.subr.bf16.mxu1 %v1973_v48  ;;  %v1916_v7 = vld [vmem:[#allocation4 + $0x354] ss:$8 sps:$4 sm:$0xff]   ;;  %v250_v48 = vld [vmem:[%s2291_s2] sm:$0x3] }
  0xac   :  { %994 = vmatprep.subr.bf16.mxu0 %v1844_v8  ;;  %v1914_v8 = vld [vmem:[#allocation4 + $0x350] ss:$8 sps:$4 sm:$0xff]  }
  0xae   :  { %1678 = vmatpush3.bf16.msra.mxu1 %v1974_v51 }
  0xaf   :  { %995 = vmatpush1.bf16.msra.mxu0 %v1842_v11  ;;  %v1928_v11 = vld [vmem:[#allocation4 + $0x374] ss:$8 sps:$4 sm:$0xff]   ;;  %1679 = vmatprep.subr.bf16.mxu1 %v1975_v32 }
  0xb0   :  { %996 = vmatprep.subr.bf16.mxu0 %v1847_v12  ;;  %v1926_v12 = vld [vmem:[#allocation4 + $0x370] ss:$8 sps:$4 sm:$0xff]  }
  0xb1   :  { %v1997_v32 = vld [vmem:[#allocation9 + $0x30] sm:$0xff]  }
  0xb2   :  { %1680 = vmatpush3.bf16.msra.mxu1 %v1976_v33  ;;  %v1998_v33 = vld [vmem:[#allocation9 + $0x38] sm:$0xff]  }
  0xb3   :  { %997 = vmatpush1.bf16.msra.mxu0 %v1845_v18  ;;  %v1944_v18 = vld [vmem:[#allocation4 + $0x3a0] ss:$8 sps:$4 sm:$0xff]   ;;  %1681 = vmatprep.subr.bf16.mxu1 %v1977_v34 }
  0xb4   :  { %998 = vmatprep.subr.bf16.mxu0 %v1850_v19  ;;  %v1952_v19 = vld [vmem:[#allocation4 + $0x3b4] ss:$8 sps:$4 sm:$0xff]   ;;  %v1644_v34 = vld [vmem:[%s2295_s6] ss:$0 sm:$0xff] }
  0xb6   :  { %1682 = vmatpush3.bf16.msra.mxu1 %v1978_v35 }
  0xb7   :  { %999 = vmatpush1.bf16.msra.mxu0 %v1848_v22  ;;  %v1956_v22 = vld [vmem:[#allocation4 + $0x3c0] ss:$8 sps:$4 sm:$0xff]  }
  0xb8   :  { %1000 = vmatprep.subr.bf16.mxu0 %v1853_v23  ;;  %v1964_v23 = vld [vmem:[#allocation4 + $0x3d4] ss:$8 sps:$4 sm:$0xff]  }
  0xbb   :  { %1001 = vmatpush1.bf16.msra.mxu0 %v1851_v24  ;;  %v249_v24 = vld [vmem:[#allocation4 + $0x3e0] sm:$0xff] }
  0xbc   :  { %1002 = vmatprep.subr.bf16.mxu0 %v1856_v27  ;;  %v1624_v26 = vcombine.high %v249_v24, %v249_v24  ;;  %v1623_v27 = vcombine.low %v249_v24, %v249_v24 }
  0xbf   :  { %1003 = vmatpush1.bf16.msra.mxu0 %v1854_v30  ;;  %v893_v30 = vsel %vm891_vm1, %v1623_v27, 0  ;;  %v1992_v27 = vld [vmem:[#allocation9 + $0x8] sm:$0xff]  }
  0xc0   :  { %1004 = vmatprep.subr.bf16.mxu0 %v1859_v31  ;;  %v123_v31 = vpack.c.bf16 %v115_v29, %v107_v28  ;;  %v1993_v28 = vld [vmem:[#allocation9 + $0x10] sm:$0xff]   ;;  %v1994_v29 = vld [vmem:[#allocation9 + $0x18] sm:$0xff]  }
  0xc3   :  { %1005 = vmatpush1.bf16.msra.mxu0 %v1857_v36  ;;  %v1979_v36 = vld [vmem:[#allocation6 + $0x70] sm:$0xff]  }
  0xc4   :  { %1006 = vmatprep.subr.bf16.mxu0 %v1862_v37  ;;  %v1980_v37 = vld [vmem:[#allocation6 + $0x30] sm:$0xff]   ;;  %1683 = vmatprep.subr.bf16.mxu1 %v1979_v36 }
  0xc5   :  { %1684 = vmatpush3.bf16.msra.mxu1 %v1980_v37 }
  0xc6   :  { %1685 = vmatprep.subr.bf16.mxu1 %v1981_v38 }
  0xc7   :  { %1007 = vmatpush1.bf16.msra.mxu0 %v1860_v41 }
  0xc8   :  { %1008 = vmatprep.subr.bf16.mxu0 %v1865_v42 }
  0xc9   :  { %1686 = vmatpush3.bf16.msra.mxu1 %v1982_v39 }
  0xca   :  { %1711 = vmatprep.subr.bf16.mxu1 %v2125_v40 }
  0xcb   :  { %1009 = vmatpush1.bf16.msra.mxu0 %v1863_v45  ;;  %v252_v45 = vlaneseq }
  0xcc   :  { %1010 = vmatprep.subr.bf16.mxu0 %v1868_v46 }
  0xcd   :  { %v253_v46 = vshrl.u32 %v252_v45, 7 }
  0xcf   :  { %1011 = vmatpush1.bf16.msra.mxu0 %v1866_v49  ;;  %v254_v47 = vsub.s32 0, %v253_v46  ;;  %v258_v49 = vsub.s32 1, %v253_v46 }
  0xd0   :  { %1012 = vmatprep.subr.bf16.mxu0 %v1874_v50 }
  0xd1   :  { %v255_v50 = vrot.slane %v250_v48, %v254_v47  ;;  %v259_v51 = vrot.slane %v250_v48, %v258_v49 }
  0xd3   :  { %1013 = vmatpush1.bf16.msra.mxu0 %v1872_v52 }
  0xd4   :  { %1014 = vmatprep.subr.bf16.mxu0 %v1880_v53 }
  0xd7   :  { %1015 = vmatpush1.bf16.msra.mxu0 %v1878_v54 }
  0xd8   :  { %1027 = vmatprep.subr.bf16.mxu0 %v1886_v57 }
  0xda   :  { %1017 = vmatmul.mubr.bf16.vlgmr.msra.gmra.mrb[0].mxu0 %v121_v60 }
  0xdb   :  { %1028 = vmatpush1.bf16.msra.mxu0 %v1884_v61  ;;  %1626 = vmatprep.mubr.msk.bf16.mxu0 %vm887_vm0, %v124_v62 }
  0xdc   :  { %1029 = vmatprep.subr.bf16.mxu0 %v1892_v63 }
  0xdf   :  { %1030 = vmatpush1.bf16.msra.mxu0 %v1890_v0 }
  0xe0   :  { %1031 = vmatprep.subr.bf16.mxu0 %v1898_v1 }
  0xe3   :  { %1032 = vmatpush1.bf16.msra.mxu0 %v1896_v2 }
  0xe4   :  { %1033 = vmatprep.subr.bf16.mxu0 %v1904_v3 }
  0xe7   :  { %1034 = vmatpush1.bf16.msra.mxu0 %v1902_v4 }
  0xe8   :  { %1035 = vmatprep.subr.bf16.mxu0 %v1910_v5 }
  0xeb   :  { %1036 = vmatpush1.bf16.msra.mxu0 %v1908_v6  ;;  %v1983_v6 = vld [vmem:[#allocation7] sm:$0xff]  }
  0xec   :  { %1037 = vmatprep.subr.bf16.mxu0 %v1916_v7  ;;  %v1984_v7 = vld [vmem:[#allocation7 + $0x8] sm:$0xff]  }
  0xef   :  { %1038 = vmatpush1.bf16.msra.mxu0 %v1914_v8  ;;  %v1985_v8 = vld [vmem:[#allocation7 + $0x10] sm:$0xff]  }
  0xf0   :  { %1039 = vmatprep.subr.bf16.mxu0 %v1922_v9  ;;  %v1986_v9 = vld [vmem:[#allocation7 + $0x18] sm:$0xff]  }
  0xf3   :  { %1040 = vmatpush1.bf16.msra.mxu0 %v1920_v10  ;;  %v1987_v10 = vld [vmem:[#allocation7 + $0x20] sm:$0xff]  }
  0xf4   :  { %1041 = vmatprep.subr.bf16.mxu0 %v1928_v11  ;;  %v1988_v11 = vld [vmem:[#allocation7 + $0x28] sm:$0xff]  }
  0xf7   :  { %1042 = vmatpush1.bf16.msra.mxu0 %v1926_v12  ;;  %v1989_v12 = vld [vmem:[#allocation7 + $0x30] sm:$0xff]  }
  0xf8   :  { %1043 = vmatprep.subr.bf16.mxu0 %v1934_v13  ;;  %v1990_v13 = vld [vmem:[#allocation7 + $0x38] sm:$0xff]  }
  0xfb   :  { %1044 = vmatpush1.bf16.msra.mxu0 %v1932_v14 }
  0xfc   :  { %1045 = vmatprep.subr.bf16.mxu0 %v1940_v15  ;;  %v1627_v15 = vld [vmem:[%s2293_s4] ss:$0 sm:$0xff] }
  0xff   :  { %1046 = vmatpush1.bf16.msra.mxu0 %v1938_v16 }
 0x100   :  { %1047 = vmatprep.subr.bf16.mxu0 %v1946_v17 }
 0x103   :  { %1048 = vmatpush1.bf16.msra.mxu0 %v1944_v18 }
 0x104   :  { %1049 = vmatprep.subr.bf16.mxu0 %v1952_v19 }
 0x107   :  { %1050 = vmatpush1.bf16.msra.mxu0 %v1950_v20 }
 0x108   :  { %1051 = vmatprep.subr.bf16.mxu0 %v1958_v21 }
 0x10b   :  { %1052 = vmatpush1.bf16.msra.mxu0 %v1956_v22 }
 0x10c   :  { %1053 = vmatprep.subr.bf16.mxu0 %v1964_v23 }
 0x10f   :  { %1054 = vmatpush1.bf16.msra.mxu0 %v1962_v25  ;;  %v1991_v25 = vld [vmem:[#allocation9] sm:$0xff]  }
 0x110   :  { %1625 = vmatprep.subr.msk.bf16.mxu0 %vm891_vm1, %v1624_v26 }
 0x113   :  { %1056 = vmatpush1.bf16.msra.mxu0 %v893_v30  ;;  %v1995_v30 = vld [vmem:[#allocation9 + $0x20] sm:$0xff]  }
 0x116   :  { %1060 = vmatmul.mubr.bf16.vlgmr.msra.gmra.mrb[0].mxu0 %v123_v31  ;;  %v1996_v31 = vld [vmem:[#allocation9 + $0x28] sm:$0xff]  }
 0x174   :  { %v932_v41 = vpop.f32.mrb[0].mxu1 }
 0x175   :  { %v934_v42 = vpop.f32.mrb[1].mxu1  ;;  %v933_v52 = vadd.f32 %v932_v41, %v255_v50 }
 0x176   :  { %v936_v43 = vpop.f32.mrb[2].mxu1  ;;  %v935_v53 = vadd.f32 %v934_v42, %v259_v51 }
 0x177   :  { %v938_v44 = vpop.f32.mrb[3].mxu1  ;;  %v937_v55 = vadd.f32 %v936_v43, %v255_v50 }
 0x178   :  { %v939_v58 = vadd.f32 %v938_v44, %v259_v51 }
 0x1e9   :  { %v1061_v54 = vpop.f32.mrb[0].mxu0 }
 0x1ea   :  { %v1752_v56 = vadd.f32 %v1061_v54, %v933_v52  ;;  %v1063_v57 = vpop.f32.mrb[1].mxu0 }
 0x1eb   :  { %v1754_v59 = vadd.f32 %v1063_v57, %v935_v53  ;;  %v1065_v60 = vpop.f32.mrb[2].mxu0 }
 0x1ec   :  { %v1756_v61 = vadd.f32 %v1065_v60, %v937_v55  ;;  %v1067_v62 = vpop.f32.mrb[3].mxu0  ;;  %v1070_v0 = vmax.f32 %v1752_v56, 0.0 }
 0x1ed   :  { %v1758_v63 = vadd.f32 %v1067_v62, %v939_v58  ;;  %v1071_v2 = vmax.f32 %v1754_v59, 0.0 }
 0x1ee   :  { %v1072_v1 = vmax.f32 %v1756_v61, 0.0 }
 0x1ef   :  { %v1073_v3 = vmax.f32 %v1758_v63, 0.0 }
 0x1f0   :  { %v1074_v4 = vpack.c.bf16 %v1072_v1, %v1070_v0 }
 0x1f1   :  { %v1075_v5 = vpack.c.bf16 %v1073_v3, %v1071_v2 }
 0x1f3   :  { %1243 = vmatprep.mubr.bf16.mxu1 %v1075_v5 }
 0x1f4   :  { %1244 = vmatmul.mubr.bf16.vlgmr.msra.gmra.mrb[4].mxu1 %v1074_v4 }
 0x1f5   :  { %1712 = vmatpush3.bf16.msra.mxu1 %v1983_v6  ;;  %1727 = vmatprep.mubr.msk.bf16.mxu1 %vm2126_vm2, %v2125_v40 }
 0x1f6   :  { %1713 = vmatprep.subr.bf16.mxu1 %v2125_v40 }
 0x1f9   :  { %1714 = vmatpush3.bf16.msra.mxu1 %v1984_v7 }
 0x1fa   :  { %1715 = vmatprep.subr.bf16.mxu1 %v2125_v40 }
 0x1fd   :  { %1716 = vmatpush3.bf16.msra.mxu1 %v1985_v8 }
 0x1fe   :  { %1717 = vmatprep.subr.bf16.mxu1 %v2125_v40 }
 0x201   :  { %1718 = vmatpush3.bf16.msra.mxu1 %v1986_v9 }
 0x202   :  { %1719 = vmatprep.subr.bf16.mxu1 %v2125_v40 }
 0x205   :  { %1720 = vmatpush3.bf16.msra.mxu1 %v1987_v10 }
 0x206   :  { %1721 = vmatprep.subr.bf16.mxu1 %v2125_v40 }
 0x209   :  { %1722 = vmatpush3.bf16.msra.mxu1 %v1988_v11 }
 0x20a   :  { %1723 = vmatprep.subr.bf16.mxu1 %v2125_v40 }
 0x20d   :  { %1724 = vmatpush3.bf16.msra.mxu1 %v1989_v12 }
 0x20e   :  { %1725 = vmatprep.subr.bf16.mxu1 %v2125_v40 }
 0x211   :  { %1726 = vmatpush3.bf16.msra.mxu1 %v1990_v13 }
 0x212   :  { %1731 = vmatprep.subr.bf16.mxu1 %v2125_v40 }
 0x2c7   :  { %v1687_v14 = vpop.f32.mrb[4].mxu1 }
 0x2c8   :  { %v1688_v16 = vpop.f32.mrb[5].mxu1 }
 0x2c9   :  { %v1689_v17 = vadd.f32 %v1688_v16, %v1687_v14  ;;  %v1690_v18 = vpop.f32.mrb[6].mxu1 }
 0x2ca   :  { %v1691_v19 = vpop.f32.mrb[7].mxu1 }
 0x2cb   :  { %v1246_v20 = vadd.f32 %v1689_v17, %v1627_v15  ;;  %v1692_v21 = vadd.f32 %v1691_v19, %v1690_v18 }
 0x2cd   :  { %v1249_v22 = vadd.f32 %v1692_v21, %v1627_v15  ;;  %v1252_v23 = vmax.f32 %v1246_v20, 0.0 }
 0x2cf   :  { %v1253_v24 = vmax.f32 %v1249_v22, 0.0 }
 0x2d1   :  { %v1254_v26 = vpack.c.bf16 %v1253_v24, %v1252_v23 }
 0x2d3   :  { %1728 = vmatmul.mubr.bf16.vlgmr.msra.gmra.mrb[8].mxu1 %v1254_v26 }
 0x2d4   :  { %1732 = vmatpush3.bf16.msra.mxu1 %v1991_v25  ;;  %1747 = vmatprep.mubr.msk.bf16.mxu1 %vm2126_vm2, %v2125_v40 }
 0x2d5   :  { %1733 = vmatprep.subr.bf16.mxu1 %v2125_v40 }
 0x2d8   :  { %1734 = vmatpush3.bf16.msra.mxu1 %v1992_v27 }
 0x2d9   :  { %1735 = vmatprep.subr.bf16.mxu1 %v2125_v40 }
 0x2dc   :  { %1736 = vmatpush3.bf16.msra.mxu1 %v1993_v28 }
 0x2dd   :  { %1737 = vmatprep.subr.bf16.mxu1 %v2125_v40 }
 0x2e0   :  { %1738 = vmatpush3.bf16.msra.mxu1 %v1994_v29 }
 0x2e1   :  { %1739 = vmatprep.subr.bf16.mxu1 %v2125_v40 }
 0x2e4   :  { %1740 = vmatpush3.bf16.msra.mxu1 %v1995_v30 }
 0x2e5   :  { %1741 = vmatprep.subr.bf16.mxu1 %v2125_v40 }
 0x2e8   :  { %1742 = vmatpush3.bf16.msra.mxu1 %v1996_v31 }
 0x2e9   :  { %1743 = vmatprep.subr.bf16.mxu1 %v2125_v40 }
 0x2ec   :  { %1744 = vmatpush3.bf16.msra.mxu1 %v1997_v32 }
 0x2ed   :  { %1745 = vmatprep.subr.bf16.mxu1 %v2125_v40  ;;  %v1653_v40 = vld [vmem:[%s2297_s8] ss:$0 sm:$0xff] }
 0x2f0   :  { %1746 = vmatpush3.bf16.msra.mxu1 %v1998_v33 }
 0x3a6   :  { %v1360_v35 = vpop.f32.mrb[8].mxu1 }
 0x3a7   :  { %v1361_v36 = vadd.f32 %v1644_v34, %v1360_v35  ;;  %v1729_v37 = vpop.f32.mrb[9].mxu1 }
 0x3a8   :  { %v1363_v38 = vpop.f32.mrb[10].mxu1 }
 0x3a9   :  { %v1364_v39 = vadd.f32 %v1644_v34, %v1363_v38  ;;  %v1730_v41 = vpop.f32.mrb[11].mxu1  ;;  %v1367_v42 = vmax.f32 %v1361_v36, 0.0 }
 0x3ab   :  { %v1368_v43 = vmax.f32 %v1364_v39, 0.0 }
 0x3ad   :  { %v1369_v44 = vpack.c.bf16 %v1368_v43, %v1367_v42 }
 0x3af   :  { %1748 = vmatmul.mubr.bf16.vlgmr.msra.gmra.mrb[12].mxu1 %v1369_v44 }
 0x482   :  { %v1475_v45 = vpop.f32.mrb[12].mxu1 }
 0x483   :  { %v1749_v46 = vpop.f32.mrb[13].mxu1  ;;  %v1476_v48 = vadd.f32 %v1653_v40, %v1475_v45 }
 0x484   :  { %v1478_v47 = vpop.f32.mrb[14].mxu1 }
 0x485   :  { %v1479_v49 = vadd.f32 %v1653_v40, %v1478_v47  ;;  %v1750_v50 = vpop.f32.mrb[15].mxu1 }
 0x487   :  { %v1669_v51 = vpack.c.bf16 %v1479_v49, %v1476_v48 }
 0x489   :  { %1670 = vst [vmem:[%s2298_s9] sm:$0xff] %v1669_v51  }
 0x48a   :  { %1496 = vsyncpa [#allocation3], 1 }
 0x48b   :  { %1497 = vsyncpa [#allocation5], 1 }
 0x48c   :  { %1498 = vsyncpa [#allocation8], 1 }

</bundles_post_ra>
